<compile_context>
chip_gen: v5e
topology: v5e:2x2
jax: 0.10.0
libtpu: 0.0.40
codegen_flags: <defaults>
</compile_context>

<pallas_src>
import functools

import jax
import jax.numpy as jnp
from jax.experimental import pallas as pl
from jax.experimental.pallas import tpu as pltpu


def _round_up(n, m):
    return ((n + m - 1) // m) * m


def linear_kernel(x_ref, wt_ref, b_ref, o_ref):
    # y = x @ W^T + b with K=3, N=5, done entirely on the VPU.
    x = x_ref[...]                  # (TB, 3)
    wt = wt_ref[...]                # (3, 5)   resident across grid steps
    b = b_ref[...]                  # (1, 5)   resident across grid steps
    y = (b
         + x[:, 0:1] * wt[0:1, :]
         + x[:, 1:2] * wt[1:2, :]
         + x[:, 2:3] * wt[2:3, :])
    o_ref[...] = y.astype(o_ref.dtype)


@functools.partial(jax.jit, static_argnames=("block_b",))
def my_model_forward(x, weight, bias, *, block_b=1024):
    """Forward pass of MyModel (nn.Linear(3, 5)).

    x: (B, 3) f32; weight: (5, 3) f32 (PyTorch layout); bias: (5,) f32.
    Returns (B, 5) f32.
    """
    B, K = x.shape
    N = weight.shape[0]

    wt = weight.T                    # (3, 5) -- glue transpose in plain JAX
    b2 = bias.reshape(1, N)          # (1, 5)

    # Batch tile: multiple of 8 (sublane), large enough for DMA pipelining.
    tb = block_b if B >= block_b else _round_up(max(B, 1), 8)
    padded_b = _round_up(B, tb)
    if padded_b != B:
        x = jnp.pad(x, ((0, padded_b - B), (0, 0)))

    grid = (padded_b // tb,)

    out = pl.pallas_call(
        linear_kernel,
        out_shape=jax.ShapeDtypeStruct((padded_b, N), x.dtype),
        grid=grid,
        in_specs=[
            pl.BlockSpec((tb, K), lambda i: (i, 0)),   # x: streamed over batch
            pl.BlockSpec((K, N), lambda i: (0, 0)),    # W^T: VMEM-resident
            pl.BlockSpec((1, N), lambda i: (0, 0)),    # bias: VMEM-resident
        ],
        out_specs=pl.BlockSpec((tb, N), lambda i: (i, 0)),
        compiler_params=pltpu.CompilerParams(
            dimension_semantics=("parallel",),         # both TCs on v7x
            vmem_limit_bytes=32 * 1024 * 1024,
        ),
        cost_estimate=pl.CostEstimate(
            flops=2 * K * N * padded_b,
            transcendentals=0,
            bytes_accessed=(padded_b * (K + N) + K * N + N) * 4,
        ),
    )(x, wt, b2)

    if padded_b != B:
        out = out[:B]
    return out


def init_params(key):
    # Deterministic init mimicking nn.Linear(3, 5): U(-1/sqrt(3), 1/sqrt(3)).
    k_w, k_b = jax.random.split(key)
    bound = 1.0 / jnp.sqrt(3.0)
    weight = jax.random.uniform(k_w, (5, 3), jnp.float32, -bound, bound)
    bias = jax.random.uniform(k_b, (5,), jnp.float32, -bound, bound)
    return weight, bias


if __name__ == "__main__":
    key = jax.random.PRNGKey(0)
    k_x, k_x2, k_p = jax.random.split(key, 3)

    weight, bias = init_params(k_p)

    # Small shape consistent with the module: batch=2, in_features=3.
    x_small = jax.random.normal(k_x, (2, 3), jnp.float32)
    y_small = my_model_forward(x_small, weight, bias)
    jax.block_until_ready(y_small)
    ref_small = x_small @ weight.T + bias
    assert y_small.shape == (2, 5)
    assert jnp.allclose(y_small, ref_small, atol=1e-5, rtol=1e-5), \
        "small-batch mismatch vs reference"

    # Larger, non-multiple batch to exercise the pipelined grid + padding path.
    B_big = 2048 + 7
    x_big = jax.random.normal(k_x2, (B_big, 3), jnp.float32)
    y_big = my_model_forward(x_big, weight, bias)
    jax.block_until_ready(y_big)
    ref_big = x_big @ weight.T + bias
    assert y_big.shape == (B_big, 5)
    assert jnp.allclose(y_big, ref_big, atol=1e-5, rtol=1e-5), \
        "large-batch mismatch vs reference"

    print("KERNEL_OK")
</pallas_src>

<mosaic_0001>
module attributes {stable_mosaic.version = 11 : i64} {
  func.func @linear_kernel(%arg0: i32, %arg1: memref<8x3xf32, #tpu.memory_space<vmem>>, %arg2: memref<3x5xf32, #tpu.memory_space<vmem>>, %arg3: memref<1x5xf32, #tpu.memory_space<vmem>>, %arg4: memref<8x5xf32, #tpu.memory_space<vmem>>) attributes {dimension_semantics = [#tpu.dimension_semantics<parallel>], iteration_bounds = array<i64: 1>, scalar_prefetch = 0 : i64, scratch_operands = 0 : i64, tpu.core_type = #tpu.core_type<tc>, window_params = [{transform_indices = @transform_0, window_bounds = array<i64: 8, 3>}, {pipeline_mode = #tpu.pipeline_mode<synchronous>, transform_indices = @transform_1, window_bounds = array<i64: 3, 5>}, {pipeline_mode = #tpu.pipeline_mode<synchronous>, transform_indices = @transform_2, window_bounds = array<i64: 1, 5>}, {transform_indices = @transform_3, window_bounds = array<i64: 8, 5>}]} {
    %c0 = arith.constant 0 : index
    %c0_0 = arith.constant 0 : index
    %0 = vector.load %arg1[%c0, %c0_0] : memref<8x3xf32, #tpu.memory_space<vmem>>, vector<8x3xf32>
    %c0_1 = arith.constant 0 : index
    %c0_2 = arith.constant 0 : index
    %1 = vector.load %arg2[%c0_1, %c0_2] : memref<3x5xf32, #tpu.memory_space<vmem>>, vector<3x5xf32>
    %c0_3 = arith.constant 0 : index
    %c0_4 = arith.constant 0 : index
    %2 = vector.load %arg3[%c0_3, %c0_4] : memref<1x5xf32, #tpu.memory_space<vmem>>, vector<1x5xf32>
    %3 = vector.extract_strided_slice %0 {offsets = [0, 0], sizes = [8, 1], strides = [1, 1]} : vector<8x3xf32> to vector<8x1xf32>
    %4 = vector.extract_strided_slice %1 {offsets = [0, 0], sizes = [1, 5], strides = [1, 1]} : vector<3x5xf32> to vector<1x5xf32>
    %5 = vector.broadcast %3 : vector<8x1xf32> to vector<8x5xf32>
    %6 = vector.broadcast %4 : vector<1x5xf32> to vector<8x5xf32>
    %7 = arith.mulf %5, %6 : vector<8x5xf32>
    %8 = vector.broadcast %2 : vector<1x5xf32> to vector<8x5xf32>
    %9 = arith.addf %8, %7 : vector<8x5xf32>
    %10 = vector.extract_strided_slice %0 {offsets = [0, 1], sizes = [8, 1], strides = [1, 1]} : vector<8x3xf32> to vector<8x1xf32>
    %11 = vector.extract_strided_slice %1 {offsets = [1, 0], sizes = [1, 5], strides = [1, 1]} : vector<3x5xf32> to vector<1x5xf32>
    %12 = vector.broadcast %10 : vector<8x1xf32> to vector<8x5xf32>
    %13 = vector.broadcast %11 : vector<1x5xf32> to vector<8x5xf32>
    %14 = arith.mulf %12, %13 : vector<8x5xf32>
    %15 = arith.addf %9, %14 : vector<8x5xf32>
    %16 = vector.extract_strided_slice %0 {offsets = [0, 2], sizes = [8, 1], strides = [1, 1]} : vector<8x3xf32> to vector<8x1xf32>
    %17 = vector.extract_strided_slice %1 {offsets = [2, 0], sizes = [1, 5], strides = [1, 1]} : vector<3x5xf32> to vector<1x5xf32>
    %18 = vector.broadcast %16 : vector<8x1xf32> to vector<8x5xf32>
    %19 = vector.broadcast %17 : vector<1x5xf32> to vector<8x5xf32>
    %20 = arith.mulf %18, %19 : vector<8x5xf32>
    %21 = arith.addf %15, %20 : vector<8x5xf32>
    %c0_5 = arith.constant 0 : index
    %c0_6 = arith.constant 0 : index
    %22 = vector.load %arg4[%c0_5, %c0_6] : memref<8x5xf32, #tpu.memory_space<vmem>>, vector<8x5xf32>
    tpu.vector_store %arg4[%c0_5, %c0_6], %21 {strides = array<i32>} : memref<8x5xf32, #tpu.memory_space<vmem>>, vector<8x5xf32>,
    return
  }
  func.func @transform_0(%arg0: i32) -> (i32, i32) {
    %c0_i32 = arith.constant 0 : i32
    %c0_i32_0 = arith.constant 0 : i32
    return %arg0, %c0_i32 : i32, i32
  }
  func.func @transform_1(%arg0: i32) -> (i32, i32) {
    %c0_i32 = arith.constant 0 : i32
    %c0_i32_0 = arith.constant 0 : i32
    %c0_i32_1 = arith.constant 0 : i32
    return %c0_i32, %c0_i32_0 : i32, i32
  }
  func.func @transform_2(%arg0: i32) -> (i32, i32) {
    %c0_i32 = arith.constant 0 : i32
    %c0_i32_0 = arith.constant 0 : i32
    %c0_i32_1 = arith.constant 0 : i32
    return %c0_i32, %c0_i32_0 : i32, i32
  }
  func.func @transform_3(%arg0: i32) -> (i32, i32) {
    %c0_i32 = arith.constant 0 : i32
    %c0_i32_0 = arith.constant 0 : i32
    return %arg0, %c0_i32 : i32, i32
  }
}

</mosaic_0001>

<bundles_post_ra>
// kernel: my_model_forward.1
= control target key start
LH: loop header
LB: loop body
LE: loop exit
PB: predicated region body
PF: predicated region fallthrough
CT: control target
= control target key end

     0   :  { %v56_v0 = vmov 0   ;;  %v57_v2 = vmov 2   ;;  %v58_v3 = vmov 1   ;;  %vm42_vm0 = vcmask 39936   ;;  %s91_s0 = inlined_call_operand.vmem [shape: f32[8,3], index: 0, kind: input, shape index: {}]   ;;  %s92_s2 = inlined_call_operand.vmem [shape: f32[1,5], index: 2, kind: input, shape index: {}]   ;;  %s93_s1 = inlined_call_operand.vmem [shape: f32[3,5], index: 1, kind: input, shape index: {}]   ;;  %s94_s3 = inlined_call_operand.vmem [shape: f32[8,5], index: 3, kind: output, shape index: {}]  }
   0x1   :  { %51 = vset.pattern.permute.xlu0 %v56_v0  ;;  %v14_v1 = vld [vmem:[%s91_s0] sm:$0xff]  ;;  %53 = vset.pattern.permute.xlu1 %v57_v2 }
   0x2   :  { %19 = vperm.xlu0 %51, %v14_v1   ;;  %36 = vperm.xlu1 %53, %v14_v1   ;;  %v15_v4 = vld [vmem:[%s93_s1] sm:$0x7] }
   0x3   :  { %v22_v6 = vperm.slane %v15_v4, 0  ;;  %v55_v7 = vld [vmem:[%s92_s2] ss:$0 sm:$0xff]  ;;  %v32_v9 = vperm.slane %v15_v4, 1  ;;  %v39_v10 = vperm.slane %v15_v4, 2 }
   0xa   :  { %52 = vset.pattern.permute.xlu0 %v58_v3 }
   0xb   :  { %29 = vperm.xlu0 %52, %v14_v1  }
  0x13   :  { %54 = vset.pattern.permute.xlu0 %v57_v2 }
  0x74   :  { %v20_v5 = vpop.permute.xlu0 %19  ;;  %v37_v11 = vpop.permute.xlu1 %36 }
  0x75   :  { %v23_v8 = vmul.f32 %v22_v6, %v20_v5  ;;  %v40_v15 = vmul.f32 %v39_v10, %v37_v11 }
  0x77   :  { %v27_v13 = vadd.f32 %v55_v7, %v23_v8 }
  0x7d   :  { %v30_v12 = vpop.permute.xlu0 %29 }
  0x7e   :  { %v33_v14 = vmul.f32 %v32_v9, %v30_v12 }
  0x80   :  { %v34_v16 = vadd.f32 %v33_v14, %v27_v13 }
  0x82   :  { %v41_v17 = vadd.f32 %v40_v15, %v34_v16 }
  0x84   :  { %43 = vst.msk [vmem:[%s94_s3] sm:$0xff] %vm42_vm0, %v41_v17 }

</bundles_post_ra>
